<compile_context>
chip_gen: v7x
topology: tpu7x:2x2x1
jax: 0.10.0
libtpu: 0.0.40
codegen_flags: <defaults>
</compile_context>

<pallas_src>
import functools
import numpy as np
import jax
import jax.numpy as jnp
from jax.experimental import pallas as pl
from jax.experimental.pallas import tpu as pltpu

_CARRY = 128  # lane-aligned width of the cross-T-tile overlap-add carry buffer


def _hann_window(win_length: int) -> np.ndarray:
    # torch.hann_window default is periodic=True
    n = np.arange(win_length)
    return 0.5 - 0.5 * np.cos(2.0 * np.pi * n / win_length)   # float64


def _round_up(x: int, m: int) -> int:
    return ((x + m - 1) // m) * m


def _make_istft_constants(n_fft: int, hop_length: int, win_length: int, T: int):
    assert win_length == n_fft, "kernel requires win_length == n_fft"
    assert n_fft % 2 == 0, "kernel requires even n_fft"
    assert win_length % hop_length == 0, "kernel assumes hop divides win_length"
    r = win_length // hop_length
    assert r - 1 <= _CARRY, "overlap factor too large for carry buffer"
    N = n_fft // 2 + 1
    S = T + r - 1                         # number of hop-sized output chunks
    output_size = (T - 1) * hop_length + win_length          # == S * hop
    pad = (win_length - hop_length) // 2

    # T-tile size (frames): 256 for long signals (MXU-output aligned on all
    # generations), otherwise a single 128-aligned tile.
    tT = min(256, _round_up(S, 128))
    T_pad = _round_up(S, tT)              # >= S so the last overlap columns fit
    KT = T_pad // tT
    assert _CARRY <= tT

    window = _hann_window(win_length)     # float64

    # irfft (norm='backward') as a real matmul: ifft = Cr @ Re + Ci @ Im.
    k = np.arange(n_fft)[:, None].astype(np.float64)
    n = np.arange(N)[None, :].astype(np.float64)
    ang = 2.0 * np.pi * k * n / n_fft
    wgt = np.full((N,), 2.0)
    wgt[0] = 1.0
    wgt[-1] = 1.0
    Cr = (wgt[None, :] * np.cos(ang)) / n_fft
    Ci = (-wgt[None, :] * np.sin(ang)) / n_fft
    # Fold the synthesis window into the basis and fuse re/im into one
    # contraction of width n_fft.  Ci[:, 0] and Ci[:, N-1] are identically zero
    # (irfft ignores imag(DC)/imag(Nyquist)), so dropping them is exact.
    Cw = np.concatenate([window[:, None] * Cr,
                         (window[:, None] * Ci)[:, 1:N - 1]], axis=1)   # (win, n_fft)
    Cw = Cw.reshape(r, hop_length, n_fft).astype(np.float32)            # (r, hop, n_fft)

    # Window envelope (sum of squared shifted windows) and its reciprocal,
    # in the kernel's output layout (hop, T_pad).
    env = np.zeros((output_size,), np.float64)
    wsq = window ** 2
    for t in range(T):
        env[t * hop_length:t * hop_length + win_length] += wsq
    # NOLA check from the reference module (host-side, on constants).
    assert (env[pad:output_size - pad] > 1e-11).all()
    env_inv = np.where(env > 1e-11, 1.0 / np.maximum(env, 1e-11), 0.0)
    env_inv = env_inv.reshape(S, hop_length).T                          # (hop, S)
    env_inv = np.pad(env_inv, ((0, 0), (0, T_pad - S)))                 # (hop, T_pad)

    return dict(
        r=r, N=N, S=S, tT=tT, T_pad=T_pad, KT=KT,
        hop=hop_length, win=win_length, pad=pad, output_size=output_size,
        Cw=jnp.asarray(Cw, dtype=jnp.bfloat16),
        env_inv=jnp.asarray(env_inv.astype(np.float32)),
    )


def _istft_kernel(x_ref, cw_ref, envinv_ref, out_ref, carry_ref, *, r, tT):
    # x_ref:      (1, n_fft, tT)   bf16  fused re/im spectrum, one T-tile
    # cw_ref:     (r, hop, n_fft)  bf16  windowed irfft basis, per hop-chunk
    # envinv_ref: (hop, tT)        f32   reciprocal window envelope (this tile)
    # out_ref:    (1, hop, tT)     f32   output tile (accumulated in place)
    # carry_ref:  (hop, _CARRY)    f32   overlap spill carried to the next tile
    kt = pl.program_id(1)

    @pl.when(kt == 0)
    def _():
        carry_ref[...] = jnp.zeros_like(carry_ref)

    x = x_ref[0]                                  # (n_fft, tT), loaded once

    # Chunk 0 covers the whole tile: seeds out_ref directly (no zero pass,
    # no separate accumulator scratch).
    out_ref[0] = jnp.dot(cw_ref[0], x, preferred_element_type=jnp.float32)
    # Add the overlap spilled from the previous T-tile (zeros at kt == 0).
    out_ref[0, :, :_CARRY] = out_ref[0, :, :_CARRY] + carry_ref[...]
    carry_ref[...] = jnp.zeros_like(carry_ref)    # start collecting this tile's spill

    # Remaining hop-chunks: matmul then fold immediately (fold overlaps with
    # the next chunk's MXU work).  Chunk j lands at local columns j..j+tT-1;
    # the last j columns spill into the carry for the next tile.
    # TODO(synk): pltpu.roll the chunk into a lane-aligned slab (XLU slot is idle
    # here) to avoid the masked misaligned RMW adds below.
    for j in range(1, r):                         # r = win // hop, small & static
        fj = jnp.dot(cw_ref[j], x, preferred_element_type=jnp.float32)   # (hop, tT)
        out_ref[0, :, j:] = out_ref[0, :, j:] + fj[:, :tT - j]
        carry_ref[:, :j] = carry_ref[:, :j] + fj[:, tT - j:]

    # NOLA normalization; single lane-dense store per tile.
    out_ref[0] = out_ref[0] * envinv_ref[...]


def istft_pallas(spec: jax.Array, n_fft: int, hop_length: int, win_length: int) -> jax.Array:
    """spec: complex64 (B, N, T) with N == n_fft//2 + 1.  Returns float32 (B, L)."""
    # TODO(synk): only the padding == "same" branch is implemented; the "center"
    # branch of the PyTorch module just delegates to torch.istft.
    B, N, T = spec.shape
    c = _make_istft_constants(n_fft, hop_length, win_length, T)
    assert N == c["N"]
    r, hop, win = c["r"], c["hop"], c["win"]
    tT, T_pad, KT = c["tT"], c["T_pad"], c["KT"]
    S, pad, output_size = c["S"], c["pad"], c["output_size"]

    # Fused real input: [Re ; Im[1:N-1]] -> (B, n_fft, T) bf16, padded to T_pad
    # frames (zero frames contribute nothing and the padded envelope is zero).
    re = jnp.real(spec)
    im = jnp.imag(spec)
    x = jnp.concatenate([re, im[:, 1:N - 1, :]], axis=1).astype(jnp.bfloat16)
    x = jnp.pad(x, ((0, 0), (0, 0), (0, T_pad - T)))            # (B, n_fft, T_pad)

    # VMEM budget from the per-step block footprint (double-buffered), capped
    # well below v7x's 64 MiB; T-tiling keeps this generation-independent.
    # TODO(synk): pipeline_mode=pl.Buffered(1) on the constant Cw / env_inv specs
    # would drop their 2x here; kept at the default for compile robustness.
    blk_x = n_fft * tT * 2
    blk_cw = r * hop * n_fft * 2
    blk_env = hop * tT * 4
    blk_out = hop * tT * 4
    scratch_bytes = hop * _CARRY * 4
    vmem_bytes = 2 * (blk_x + blk_cw + blk_env + blk_out) + scratch_bytes
    vmem_limit = min(48 * 1024 * 1024,
                     max(16 * 1024 * 1024, int(1.5 * vmem_bytes) + (2 << 20)))

    flops = int(B * (2 * win * n_fft * T_pad + (r + 1) * hop * T_pad))
    bytes_accessed = int(B * (n_fft * T_pad * 2 + hop * T_pad * 4)
                         + r * hop * n_fft * 2 + hop * T_pad * 4)

    kernel = functools.partial(_istft_kernel, r=r, tT=tT)
    y2dT = pl.pallas_call(
        kernel,
        out_shape=jax.ShapeDtypeStruct((B, hop, T_pad), jnp.float32),
        grid=(B, KT),
        in_specs=[
            pl.BlockSpec((1, n_fft, tT), lambda b, kt: (b, 0, kt)),     # spec tile
            pl.BlockSpec((r, hop, n_fft), lambda b, kt: (0, 0, 0)),     # basis (const)
            pl.BlockSpec((hop, tT), lambda b, kt: (0, kt)),             # 1/envelope
        ],
        out_specs=pl.BlockSpec((1, hop, tT), lambda b, kt: (b, 0, kt)),
        scratch_shapes=[pltpu.VMEM((hop, _CARRY), jnp.float32)],        # overlap carry
        compiler_params=pltpu.CompilerParams(
            # TODO(synk): add a second parallel axis (split hop-rows or T halves)
            # so B == 1 still uses both v7x TensorCores.
            dimension_semantics=("parallel", "arbitrary"),
            vmem_limit_bytes=vmem_limit,
        ),
        cost_estimate=pl.CostEstimate(
            flops=flops, transcendentals=0, bytes_accessed=bytes_accessed),
    )(x, c["Cw"], c["env_inv"])

    # Glue: (B, hop, T_pad) -> trim lane pad -> (B, S, hop) -> (B, S*hop) -> trim edges.
    # TODO(synk): when hop >= 128, emit the kernel output directly in (S, hop)
    # layout so this f32 transpose (an extra HBM pass) becomes a free view.
    y_full = jnp.transpose(y2dT[:, :, :S], (0, 2, 1)).reshape(B, S * hop)
    return y_full[:, pad:output_size - pad]


def _istft_reference_np(spec_np: np.ndarray, n_fft: int, hop_length: int,
                        win_length: int) -> np.ndarray:
    """Pure-numpy re-implementation of the PyTorch 'same'-padding forward."""
    B, N, T = spec_np.shape
    window = _hann_window(win_length)
    pad = (win_length - hop_length) // 2
    output_size = (T - 1) * hop_length + win_length
    ifft = np.fft.irfft(spec_np.astype(np.complex128), n=n_fft, axis=1)   # norm='backward'
    ifft = ifft * window[None, :, None]
    y = np.zeros((B, output_size), np.float64)
    env = np.zeros((output_size,), np.float64)
    for t in range(T):
        y[:, t * hop_length:t * hop_length + win_length] += ifft[:, :, t]
        env[t * hop_length:t * hop_length + win_length] += window ** 2
    y = y[:, pad:output_size - pad]
    env = env[pad:output_size - pad]
    return (y / env[None, :]).astype(np.float32)


if __name__ == "__main__":
    def run_case(n_fft, hop_length, win_length, B, T):
        N = n_fft // 2 + 1
        key = jax.random.PRNGKey(0)
        kr, ki = jax.random.split(key)
        re = jax.random.normal(kr, (B, N, T), jnp.float32)
        im = jax.random.normal(ki, (B, N, T), jnp.float32)
        # DC and Nyquist bins of a real-signal spectrum are real.
        im = im.at[:, 0, :].set(0.0)
        im = im.at[:, N - 1, :].set(0.0)
        spec = (re + 1j * im).astype(jnp.complex64)

        y = jax.block_until_ready(istft_pallas(spec, n_fft, hop_length, win_length))
        y_ref = _istft_reference_np(np.asarray(spec), n_fft, hop_length, win_length)
        # Tolerance accounts for bf16 matmul operands (f32 accumulation).
        np.testing.assert_allclose(np.asarray(y), y_ref, rtol=2e-2, atol=2e-2)
        pad = (win_length - hop_length) // 2
        expected_L = (T - 1) * hop_length + win_length - 2 * pad
        assert y.shape == (B, expected_L)

    # Small shapes consistent with the module's forward: spec (B, N, T) complex.
    run_case(n_fft=16, hop_length=4, win_length=16, B=2, T=8)      # single T-tile
    run_case(n_fft=32, hop_length=8, win_length=32, B=2, T=280)    # multi-tile (exercises carry)
    print("KERNEL_OK")
</pallas_src>

<mosaic_0001>
module attributes {stable_mosaic.version = 11 : i64} {
  func.func @_istft_kernel(%arg0: i32, %arg1: i32, %arg2: memref<1x16x128xbf16, #tpu.memory_space<vmem>>, %arg3: memref<4x4x16xbf16, #tpu.memory_space<vmem>>, %arg4: memref<4x128xf32, #tpu.memory_space<vmem>>, %arg5: memref<1x4x128xf32, #tpu.memory_space<vmem>>, %arg6: memref<4x128xf32, #tpu.memory_space<vmem>>) attributes {dimension_semantics = [#tpu.dimension_semantics<parallel>, #tpu.dimension_semantics<arbitrary>], iteration_bounds = array<i64: 2, 1>, scalar_prefetch = 0 : i64, scratch_operands = 1 : i64, tpu.core_type = #tpu.core_type<tc>, window_params = [{transform_indices = @transform_0, window_bounds = array<i64: 1, 16, 128>}, {pipeline_mode = #tpu.pipeline_mode<synchronous>, transform_indices = @transform_1, window_bounds = array<i64: 4, 4, 16>}, {transform_indices = @transform_2, window_bounds = array<i64: 4, 128>}, {transform_indices = @transform_3, window_bounds = array<i64: 1, 4, 128>}]} {
    %c0_i32 = arith.constant 0 : i32
    %0 = arith.cmpi eq, %arg1, %c0_i32 : i32
    %1 = arith.extui %0 : i1 to i32
    %c0_i32_0 = arith.constant 0 : i32
    %2 = arith.cmpi ne, %1, %c0_i32_0 : i32
    scf.if %2 {
      %cst_67 = arith.constant 0.000000e+00 : f32
      %69 = vector.broadcast %cst_67 : f32 to vector<4x128xf32>
      %c0_68 = arith.constant 0 : index
      %c0_69 = arith.constant 0 : index
      %70 = vector.load %arg6[%c0_68, %c0_69] : memref<4x128xf32, #tpu.memory_space<vmem>>, vector<4x128xf32>
      tpu.vector_store %arg6[%c0_68, %c0_69], %69 {strides = array<i32>} : memref<4x128xf32, #tpu.memory_space<vmem>>, vector<4x128xf32>,
    } else {
    }
    %c0 = arith.constant 0 : index
    %c0_1 = arith.constant 0 : index
    %c0_2 = arith.constant 0 : index
    %3 = vector.load %arg2[%c0, %c0_1, %c0_2] : memref<1x16x128xbf16, #tpu.memory_space<vmem>>, vector<1x16x128xbf16>
    %4 = vector.shape_cast %3 : vector<1x16x128xbf16> to vector<16x128xbf16>
    %c0_3 = arith.constant 0 : index
    %c0_4 = arith.constant 0 : index
    %c0_5 = arith.constant 0 : index
    %5 = vector.load %arg3[%c0_3, %c0_4, %c0_5] : memref<4x4x16xbf16, #tpu.memory_space<vmem>>, vector<1x4x16xbf16>
    %6 = vector.shape_cast %5 : vector<1x4x16xbf16> to vector<4x16xbf16>
    %cst = arith.constant dense<0.000000e+00> : vector<4x128xf32>
    %7 = tpu.matmul %6, %4, %cst {dimension_numbers = #tpu.dot_dimension_numbers<[1], [0], [0], [1], [0, 0, 1, 1], [], []>} : vector<4x16xbf16>, vector<16x128xbf16>, vector<4x128xf32> -> vector<4x128xf32>
    %c0_6 = arith.constant 0 : index
    %c0_7 = arith.constant 0 : index
    %c0_8 = arith.constant 0 : index
    %8 = vector.load %arg5[%c0_6, %c0_7, %c0_8] : memref<1x4x128xf32, #tpu.memory_space<vmem>>, vector<1x4x128xf32>
    %9 = vector.shape_cast %8 : vector<1x4x128xf32> to vector<4x128xf32>
    %10 = vector.shape_cast %7 : vector<4x128xf32> to vector<1x4x128xf32>
    tpu.vector_store %arg5[%c0_6, %c0_7, %c0_8], %10 {strides = array<i32>} : memref<1x4x128xf32, #tpu.memory_space<vmem>>, vector<1x4x128xf32>,
    %c0_9 = arith.constant 0 : index
    %c0_10 = arith.constant 0 : index
    %c0_11 = arith.constant 0 : index
    %11 = vector.load %arg5[%c0_9, %c0_10, %c0_11] : memref<1x4x128xf32, #tpu.memory_space<vmem>>, vector<1x4x128xf32>
    %12 = vector.shape_cast %11 : vector<1x4x128xf32> to vector<4x128xf32>
    %c0_12 = arith.constant 0 : index
    %c0_13 = arith.constant 0 : index
    %13 = vector.load %arg6[%c0_12, %c0_13] : memref<4x128xf32, #tpu.memory_space<vmem>>, vector<4x128xf32>
    %14 = arith.addf %12, %13 : vector<4x128xf32>
    %c0_14 = arith.constant 0 : index
    %c0_15 = arith.constant 0 : index
    %c0_16 = arith.constant 0 : index
    %15 = vector.load %arg5[%c0_14, %c0_15, %c0_16] : memref<1x4x128xf32, #tpu.memory_space<vmem>>, vector<1x4x128xf32>
    %16 = vector.shape_cast %15 : vector<1x4x128xf32> to vector<4x128xf32>
    %17 = vector.shape_cast %14 : vector<4x128xf32> to vector<1x4x128xf32>
    tpu.vector_store %arg5[%c0_14, %c0_15, %c0_16], %17 {strides = array<i32>} : memref<1x4x128xf32, #tpu.memory_space<vmem>>, vector<1x4x128xf32>,
    %cst_17 = arith.constant 0.000000e+00 : f32
    %18 = vector.broadcast %cst_17 : f32 to vector<4x128xf32>
    %c0_18 = arith.constant 0 : index
    %c0_19 = arith.constant 0 : index
    %19 = vector.load %arg6[%c0_18, %c0_19] : memref<4x128xf32, #tpu.memory_space<vmem>>, vector<4x128xf32>
    tpu.vector_store %arg6[%c0_18, %c0_19], %18 {strides = array<i32>} : memref<4x128xf32, #tpu.memory_space<vmem>>, vector<4x128xf32>,
    %c1 = arith.constant 1 : index
    %c0_20 = arith.constant 0 : index
    %c0_21 = arith.constant 0 : index
    %20 = vector.load %arg3[%c1, %c0_20, %c0_21] : memref<4x4x16xbf16, #tpu.memory_space<vmem>>, vector<1x4x16xbf16>
    %21 = vector.shape_cast %20 : vector<1x4x16xbf16> to vector<4x16xbf16>
    %cst_22 = arith.constant dense<0.000000e+00> : vector<4x128xf32>
    %22 = tpu.matmul %21, %4, %cst_22 {dimension_numbers = #tpu.dot_dimension_numbers<[1], [0], [0], [1], [0, 0, 1, 1], [], []>} : vector<4x16xbf16>, vector<16x128xbf16>, vector<4x128xf32> -> vector<4x128xf32>
    %c0_23 = arith.constant 0 : index
    %c0_24 = arith.constant 0 : index
    %c1_25 = arith.constant 1 : index
    %23 = vector.load %arg5[%c0_23, %c0_24, %c1_25] : memref<1x4x128xf32, #tpu.memory_space<vmem>>, vector<1x4x127xf32>
    %24 = vector.shape_cast %23 : vector<1x4x127xf32> to vector<4x127xf32>
    %25 = vector.extract_strided_slice %22 {offsets = [0, 0], sizes = [4, 127], strides = [1, 1]} : vector<4x128xf32> to vector<4x127xf32>
    %26 = arith.addf %24, %25 : vector<4x127xf32>
    %c0_26 = arith.constant 0 : index
    %c0_27 = arith.constant 0 : index
    %c1_28 = arith.constant 1 : index
    %27 = vector.load %arg5[%c0_26, %c0_27, %c1_28] : memref<1x4x128xf32, #tpu.memory_space<vmem>>, vector<1x4x127xf32>
    %28 = vector.shape_cast %27 : vector<1x4x127xf32> to vector<4x127xf32>
    %29 = vector.shape_cast %26 : vector<4x127xf32> to vector<1x4x127xf32>
    tpu.vector_store %arg5[%c0_26, %c0_27, %c1_28], %29 {strides = array<i32>} : memref<1x4x128xf32, #tpu.memory_space<vmem>>, vector<1x4x127xf32>,
    %c0_29 = arith.constant 0 : index
    %c0_30 = arith.constant 0 : index
    %30 = vector.load %arg6[%c0_29, %c0_30] : memref<4x128xf32, #tpu.memory_space<vmem>>, vector<4x1xf32>
    %31 = vector.extract_strided_slice %22 {offsets = [0, 127], sizes = [4, 1], strides = [1, 1]} : vector<4x128xf32> to vector<4x1xf32>
    %32 = arith.addf %30, %31 : vector<4x1xf32>
    %c0_31 = arith.constant 0 : index
    %c0_32 = arith.constant 0 : index
    %33 = vector.load %arg6[%c0_31, %c0_32] : memref<4x128xf32, #tpu.memory_space<vmem>>, vector<4x1xf32>
    tpu.vector_store %arg6[%c0_31, %c0_32], %32 {strides = array<i32>} : memref<4x128xf32, #tpu.memory_space<vmem>>, vector<4x1xf32>,
    %c2 = arith.constant 2 : index
    %c0_33 = arith.constant 0 : index
    %c0_34 = arith.constant 0 : index
    %34 = vector.load %arg3[%c2, %c0_33, %c0_34] : memref<4x4x16xbf16, #tpu.memory_space<vmem>>, vector<1x4x16xbf16>
    %35 = vector.shape_cast %34 : vector<1x4x16xbf16> to vector<4x16xbf16>
    %cst_35 = arith.constant dense<0.000000e+00> : vector<4x128xf32>
    %36 = tpu.matmul %35, %4, %cst_35 {dimension_numbers = #tpu.dot_dimension_numbers<[1], [0], [0], [1], [0, 0, 1, 1], [], []>} : vector<4x16xbf16>, vector<16x128xbf16>, vector<4x128xf32> -> vector<4x128xf32>
    %c0_36 = arith.constant 0 : index
    %c0_37 = arith.constant 0 : index
    %c2_38 = arith.constant 2 : index
    %37 = vector.load %arg5[%c0_36, %c0_37, %c2_38] : memref<1x4x128xf32, #tpu.memory_space<vmem>>, vector<1x4x126xf32>
    %38 = vector.shape_cast %37 : vector<1x4x126xf32> to vector<4x126xf32>
    %39 = vector.extract_strided_slice %36 {offsets = [0, 0], sizes = [4, 126], strides = [1, 1]} : vector<4x128xf32> to vector<4x126xf32>
    %40 = arith.addf %38, %39 : vector<4x126xf32>
    %c0_39 = arith.constant 0 : index
    %c0_40 = arith.constant 0 : index
    %c2_41 = arith.constant 2 : index
    %41 = vector.load %arg5[%c0_39, %c0_40, %c2_41] : memref<1x4x128xf32, #tpu.memory_space<vmem>>, vector<1x4x126xf32>
    %42 = vector.shape_cast %41 : vector<1x4x126xf32> to vector<4x126xf32>
    %43 = vector.shape_cast %40 : vector<4x126xf32> to vector<1x4x126xf32>
    tpu.vector_store %arg5[%c0_39, %c0_40, %c2_41], %43 {strides = array<i32>} : memref<1x4x128xf32, #tpu.memory_space<vmem>>, vector<1x4x126xf32>,
    %c0_42 = arith.constant 0 : index
    %c0_43 = arith.constant 0 : index
    %44 = vector.load %arg6[%c0_42, %c0_43] : memref<4x128xf32, #tpu.memory_space<vmem>>, vector<4x2xf32>
    %45 = vector.extract_strided_slice %36 {offsets = [0, 126], sizes = [4, 2], strides = [1, 1]} : vector<4x128xf32> to vector<4x2xf32>
    %46 = arith.addf %44, %45 : vector<4x2xf32>
    %c0_44 = arith.constant 0 : index
    %c0_45 = arith.constant 0 : index
    %47 = vector.load %arg6[%c0_44, %c0_45] : memref<4x128xf32, #tpu.memory_space<vmem>>, vector<4x2xf32>
    tpu.vector_store %arg6[%c0_44, %c0_45], %46 {strides = array<i32>} : memref<4x128xf32, #tpu.memory_space<vmem>>, vector<4x2xf32>,
    %c3 = arith.constant 3 : index
    %c0_46 = arith.constant 0 : index
    %c0_47 = arith.constant 0 : index
    %48 = vector.load %arg3[%c3, %c0_46, %c0_47] : memref<4x4x16xbf16, #tpu.memory_space<vmem>>, vector<1x4x16xbf16>
    %49 = vector.shape_cast %48 : vector<1x4x16xbf16> to vector<4x16xbf16>
    %cst_48 = arith.constant dense<0.000000e+00> : vector<4x128xf32>
    %50 = tpu.matmul %49, %4, %cst_48 {dimension_numbers = #tpu.dot_dimension_numbers<[1], [0], [0], [1], [0, 0, 1, 1], [], []>} : vector<4x16xbf16>, vector<16x128xbf16>, vector<4x128xf32> -> vector<4x128xf32>
    %c0_49 = arith.constant 0 : index
    %c0_50 = arith.constant 0 : index
    %c3_51 = arith.constant 3 : index
    %51 = vector.load %arg5[%c0_49, %c0_50, %c3_51] : memref<1x4x128xf32, #tpu.memory_space<vmem>>, vector<1x4x125xf32>
    %52 = vector.shape_cast %51 : vector<1x4x125xf32> to vector<4x125xf32>
    %53 = vector.extract_strided_slice %50 {offsets = [0, 0], sizes = [4, 125], strides = [1, 1]} : vector<4x128xf32> to vector<4x125xf32>
    %54 = arith.addf %52, %53 : vector<4x125xf32>
    %c0_52 = arith.constant 0 : index
    %c0_53 = arith.constant 0 : index
    %c3_54 = arith.constant 3 : index
    %55 = vector.load %arg5[%c0_52, %c0_53, %c3_54] : memref<1x4x128xf32, #tpu.memory_space<vmem>>, vector<1x4x125xf32>
    %56 = vector.shape_cast %55 : vector<1x4x125xf32> to vector<4x125xf32>
    %57 = vector.shape_cast %54 : vector<4x125xf32> to vector<1x4x125xf32>
    tpu.vector_store %arg5[%c0_52, %c0_53, %c3_54], %57 {strides = array<i32>} : memref<1x4x128xf32, #tpu.memory_space<vmem>>, vector<1x4x125xf32>,
    %c0_55 = arith.constant 0 : index
    %c0_56 = arith.constant 0 : index
    %58 = vector.load %arg6[%c0_55, %c0_56] : memref<4x128xf32, #tpu.memory_space<vmem>>, vector<4x3xf32>
    %59 = vector.extract_strided_slice %50 {offsets = [0, 125], sizes = [4, 3], strides = [1, 1]} : vector<4x128xf32> to vector<4x3xf32>
    %60 = arith.addf %58, %59 : vector<4x3xf32>
    %c0_57 = arith.constant 0 : index
    %c0_58 = arith.constant 0 : index
    %61 = vector.load %arg6[%c0_57, %c0_58] : memref<4x128xf32, #tpu.memory_space<vmem>>, vector<4x3xf32>
    tpu.vector_store %arg6[%c0_57, %c0_58], %60 {strides = array<i32>} : memref<4x128xf32, #tpu.memory_space<vmem>>, vector<4x3xf32>,
    %c0_59 = arith.constant 0 : index
    %c0_60 = arith.constant 0 : index
    %c0_61 = arith.constant 0 : index
    %62 = vector.load %arg5[%c0_59, %c0_60, %c0_61] : memref<1x4x128xf32, #tpu.memory_space<vmem>>, vector<1x4x128xf32>
    %63 = vector.shape_cast %62 : vector<1x4x128xf32> to vector<4x128xf32>
    %c0_62 = arith.constant 0 : index
    %c0_63 = arith.constant 0 : index
    %64 = vector.load %arg4[%c0_62, %c0_63] : memref<4x128xf32, #tpu.memory_space<vmem>>, vector<4x128xf32>
    %65 = arith.mulf %63, %64 : vector<4x128xf32>
    %c0_64 = arith.constant 0 : index
    %c0_65 = arith.constant 0 : index
    %c0_66 = arith.constant 0 : index
    %66 = vector.load %arg5[%c0_64, %c0_65, %c0_66] : memref<1x4x128xf32, #tpu.memory_space<vmem>>, vector<1x4x128xf32>
    %67 = vector.shape_cast %66 : vector<1x4x128xf32> to vector<4x128xf32>
    %68 = vector.shape_cast %65 : vector<4x128xf32> to vector<1x4x128xf32>
    tpu.vector_store %arg5[%c0_64, %c0_65, %c0_66], %68 {strides = array<i32>} : memref<1x4x128xf32, #tpu.memory_space<vmem>>, vector<1x4x128xf32>,
    return
  }
  func.func @transform_0(%arg0: i32, %arg1: i32) -> (i32, i32, i32) {
    %c0_i32 = arith.constant 0 : i32
    %c0_i32_0 = arith.constant 0 : i32
    return %arg0, %c0_i32, %arg1 : i32, i32, i32
  }
  func.func @transform_1(%arg0: i32, %arg1: i32) -> (i32, i32, i32) {
    %c0_i32 = arith.constant 0 : i32
    %c0_i32_0 = arith.constant 0 : i32
    %c0_i32_1 = arith.constant 0 : i32
    %c0_i32_2 = arith.constant 0 : i32
    return %c0_i32, %c0_i32_0, %c0_i32_1 : i32, i32, i32
  }
  func.func @transform_2(%arg0: i32, %arg1: i32) -> (i32, i32) {
    %c0_i32 = arith.constant 0 : i32
    %c0_i32_0 = arith.constant 0 : i32
    return %c0_i32, %arg1 : i32, i32
  }
  func.func @transform_3(%arg0: i32, %arg1: i32) -> (i32, i32, i32) {
    %c0_i32 = arith.constant 0 : i32
    %c0_i32_0 = arith.constant 0 : i32
    return %arg0, %c0_i32, %arg1 : i32, i32, i32
  }
}

</mosaic_0001>

<bundles_post_ra>
// kernel: tpu_custom_call.1
= control target key start
LH: loop header
LB: loop body
LE: loop exit
PB: predicated region body
PF: predicated region fallthrough
CT: control target
= control target key end

     0   :  { %8 = vsyncpa [#allocation4], 0  ;;  %s1154_s0 = inlined_call_operand.hbm [shape: bf16[2,16,128], index: 0, kind: input, shape index: {}]   ;;  %s1155_s1 = inlined_call_operand.hbm [shape: bf16[4,4,16], index: 1, kind: input, shape index: {}]   ;;  %s1156_s2 = inlined_call_operand.vmem [shape: f32[4,128], index: 2, kind: input, shape index: {}]   ;;  %s1157_s3 = inlined_call_operand.hbm [shape: f32[2,4,128], index: 3, kind: output, shape index: {}]  }
   0x1   :  { %10 = vsyncpa [#allocation4 + $0x1], 0 }
   0x2   :  { %11 = vsyncpa [#allocation7], 0 }
   0x3   :  { %12 = vsyncpa [#allocation5], 0 }
   0x4   :  { %14 = vsyncpa [#allocation5 + $0x1], 0  ;;  %s915_s12 = smov 0   ;;  %s917_s13 = smov 0  }
   0x5   :  { %s919_s14 = smov 0   ;;  %s921_s15 = smov 0  }
   0x6   :  { %s923_s16 = smov 0   ;;  %s925_s17 = smov 0  }
   0x7 LB: > { %s599_s18 = sadd.s32 4294967295, %s881_s17   ;;  %s600_s19 = sadd.s32 4294967294, %s881_s17   ;;  %s881_s17 = sphi %s925_s17, %s20_s17   ;;  %s877_s16 = sphi %s923_s16, %s1181_s16   ;;  %s873_s15 = sphi %s921_s15, %s1180_s15   ;;  %s869_s14 = sphi %s919_s14, %s1179_s14   ;;  %s865_s13 = sphi %s917_s13, %s1178_s13   ;;  %s861_s12 = sphi %s915_s12, %s1177_s12  }
   0x8   : > { %p54_p0 = scmp.ne.s32.totalorder %s865_s13, %s861_s12  ;;  %p949_p1 = scmp.eq.s32.totalorder %s599_s18, 0 }
   0x9   : > { %p953_p2 = scmp.eq.s32.totalorder %s599_s18, 1  ;;  %p133_p3 = scmp.eq.s32.totalorder %s600_s19, 1 }
   0xa   : > { %s1162_s20 = scalar_select %p949_p1, 1, 0 }
   0xb   : > { %s1163_s21 = scalar_select %p953_p2, 1, 0 }
   0xc   : > { %p959_p4 = por %p949_p1, %p54_p0  ;;  %p601_p5 = scmp.ge.s32.totalorder %s881_s17, 1 }
   0xd   : > { %p964_p6 = por %p133_p3, %p54_p0  ;;  %p140_p7 = scmp.lt.s32.totalorder %s881_s17, 3 }
   0xe   : > { %s1164_s22 = scalar_select %p959_p4, 1, 0 }
   0xf   : > { %s1165_s23 = scalar_select %p964_p6, 1, 0 }
  0x10   : > { %p969_p8 = pnand %p601_p5, %p140_p7  ;;  %s883_s25 = smov [#allocation6]  }
  0x11   : > { %s152_s26 = sshll.u32 %s883_s25, 4  ;;  %s32_s28 = sadd.s32 1, %s877_s16  ;;  %s153_s26 = int_to_ptr.vmem [resolvable:$true] %s152_s26 }
  0x12   : > { %s1166_s24 = scalar_select %p969_p8, 1, 0 }
  0x13   : > { %p662_p9 = pneg %p969_p8  ;;  %s737_s4 = scalar_lea.hbm %s1155_s1, 128 }
  0x14   : > { %p738_p12 = scmp.ne.s32.totalorder %s1155_s1, %s737_s4  ;;  %p744_p5 = scmp.lt.u32.totalorder %s737_s4, %s1155_s1 }
  0x15   : > { %p978_p11 = pnand %p662_p9, %p949_p1 }
  0x17   : > { %p739_p13 = pneg %p978_p11 }
  0x19   : > { %p740_p0 = pnand %p739_p13, %p738_p12 }
  0x1b   : > { %p741_p3 = pneg %p740_p0 }
  0x1d   : > { %p746_p7 = pnand %p744_p5, %p741_p3 }
  0x1f   : > { %749 = shalt.err (!%p746_p7)
}
  0x20   : > { %s750_s9 = scalar_lea.vmem %s153_s26, 128  ;;  %p758_p1 = scmp.lt.s32.totalorder %s153_s26, %s153_s26 }
  0x21   : > { %p751_p9 = scmp.ne.s32.totalorder %s153_s26, %s750_s9  ;;  %p759_p4 = scmp.lt.s32.totalorder %s750_s9, %s750_s9 }
  0x23   : > { %p753_p10 = pnand %p751_p9, %p739_p13  ;;  %p760_p8 = por %p759_p4, %p758_p1 }
  0x25   : > { %p754_p6 = pneg %p753_p10 }
  0x27   : > { %p761_p2 = pnand %p760_p8, %p754_p6 }
  0x29   : > { %764 = shalt.err (!%p761_p2)
}
  0x2a   : > { %s884_s10 = smov 32   ;;  %s885_s11 = smov 2  }
  0x2b   : > { %665 = dma.hbm_to_vmem [thread:$0]  (!%p978_p11), %s1155_s1, 128, %s153_s26, [#allocation7], %s884_s10, %s884_s10, %s885_s11  }
  0x2c   : > { %p34_p1 = scmp.ge.s32.totalorder %s32_s28, 2  ;;  %s41_s25 = sadd.s32 1, %s869_s14 }
  0x2d   : > { %p48_p2 = scmp.ne.s32.totalorder %s869_s14, %s865_s13  ;;  %p49_p4 = scmp.eq.s32.totalorder %s881_s17, 0 }
  0x2e   : > { %s1183_s28 = smov (%p34_p1, %s32_s28), 0  ;;  %p1169_p8 = scmp.ne.s32.totalorder %s1163_s21, 0 }
  0x2f   : > { %p1005_p6 = por %p49_p4, %p48_p2  ;;  %s36_s27 = ssub.s32 %s877_s16, %s1183_s28 }
  0x30   : > { %p1011_p10 = por %p1169_p8, %p48_p2  ;;  %p675_p12 = scmp.lt.s32.totalorder %s881_s17, 2 }
  0x31   : > { %p39_p11 = scmp.eq.s32.totalorder %s36_s27, 0  ;;  %s173_s26 = sand.u32 1, %s869_s14  }
  0x32   : > { %s605_s4 = sshll.u32 %s173_s26, 3  ;;  %s621_s6 = sshll.u32 %s877_s16, 7 }
  0x33   : > { %s1020_s5 = scalar_select %p39_p11, %s869_s14, %s41_s25  }
  0x34   : > { %s1026_s9 = scalar_lea.hbm %s1154_s0, %s621_s6  ;;  %s177_s21 = scalar_lea.vmem [#allocation3], %s605_s4 }
  0x35   : > { %s185_s10 = sshll.u32 %s177_s21, 4  ;;  %p1032_p13 = pnand %p675_p12, %p1005_p6  ;;  %s1028_s10 = int_to_ptr.vmem [resolvable:$true] %s185_s10 }
  0x36   : > { %s1036_s18 = scalar_lea.sflag [#allocation4], %s173_s26  ;;  %s765_s19 = scalar_lea.hbm %s1026_s9, 128 }
  0x37   : > { %p766_p0 = scmp.ne.s32.totalorder %s1026_s9, %s765_s19  ;;  %p767_p3 = pneg %p1032_p13 }
  0x38   : > { %s770_s29 = scalar_lea.hbm %s1154_s0, 256  ;;  %p771_p9 = scmp.lt.u32.totalorder %s1026_s9, %s1154_s0 }
  0x39   : > { %p768_p5 = pnand %p767_p3, %p766_p0  ;;  %p772_p1 = scmp.lt.u32.totalorder %s770_s29, %s765_s19 }
  0x3a   : > { %p774_p4 = scmp.lt.u32.totalorder %s765_s19, %s1026_s9 }
  0x3b   : > { %p769_p7 = pneg %p768_p5  ;;  %p773_p2 = por %p772_p1, %p771_p9 }
  0x3d   : > { %p775_p6 = por %p774_p4, %p773_p2 }
  0x3f   : > { %p776_p8 = pnand %p775_p6, %p769_p7 }
  0x41   : > { %779 = shalt.err (!%p776_p8)
}
  0x42   : > { %s780_s26 = scalar_lea.vmem %s1028_s10, 128  ;;  %s886_s7 = smov [#allocation3]  }
  0x43   : > { %p781_p12 = scmp.ne.s32.totalorder %s1028_s10, %s780_s26  ;;  %s785_s8 = sshll.u32 %s886_s7, 4  ;;  %s786_s8 = int_to_ptr.vmem [resolvable:$false] %s785_s8 }
  0x44   : > { %s787_s21 = scalar_lea.vmem %s786_s8, 256  ;;  %p788_p5 = scmp.lt.s32.totalorder %s1028_s10, %s786_s8 }
  0x45   : > { %p783_p11 = pnand %p781_p12, %p767_p3  ;;  %p789_p9 = scmp.lt.s32.totalorder %s787_s21, %s780_s26 }
  0x47   : > { %p784_p0 = pneg %p783_p11  ;;  %p790_p1 = por %p789_p9, %p788_p5 }
  0x49   : > { %p791_p2 = pnand %p790_p1, %p784_p0 }
  0x4b   : > { %794 = shalt.err (!%p791_p2)
}
  0x4c   : > { %s887_s19 = smov 64   ;;  %s888_s25 = smov 4  }
  0x4d   : > { %669 = dma.hbm_to_vmem [thread:$0]  (!%p1032_p13), %s1026_s9, 128, %s1028_s10, %s1036_s18, %s887_s19, %s887_s19, %s888_s25  }
  0x4e   : > { %p1172_p3 = scmp.ne.s32.totalorder %s1166_s24, 0 }
  0x4f   : > { %s1067_s27 = sand.u32 (!%p1172_p3), 1, %s865_s13   ;;  %p1173_p7 = scmp.ne.s32.totalorder (!%p1172_p3), %s1164_s22, 0 }
  0x50   : > { %197 = sbr.rel (%p1172_p3) target bundleno = 470 (0x1d6), region = 32  ;;  %s609_s29 = sshll.u32 (!%p1172_p3), %s1067_s27, 3 }
  0x51   : > { %s200_s4 = scalar_lea.sflag (!%p1172_p3), [#allocation4], %s1067_s27  ;;  %s203_s6 = scalar_lea.vmem (!%p1172_p3), [#allocation3], %s609_s29 }
  0x57   : > { %848 = dma.done.wait (%p1173_p7), %s200_s4, 128  }
  0x58   : > { %850 = vsyncadd (%p1173_p7), %s200_s4, 4294967168  ;;  %p1174_p4 = scmp.ne.s32.totalorder %s1162_s20, 0 }
  0x5a   : > { %852 = dma.done.wait (%p1174_p4), [#allocation7], 128  }
  0x5b   : > { %854 = vsyncadd (%p1174_p4), [#allocation7], 4294967168  ;;  %v889_v0 = vmov 0.0   ;;  %vm890_vm0 = vmmov 0   ;;  %v736_v1 = vld [vmem:[%s203_s6] sm:$0xff]   ;;  %vm253_vm1 = vcmask 130048  }
  0x5c   : > { %243 = vst [vmem:[#allocation2] sm:$0xf] %v889_v0  ;;  %630 = vmatprep.subr.bf16.mxu0 %v889_v0  ;;  %636 = vmatprep.subr.bf16.mxu1 %v889_v0  ;;  %v246_v2 = vld [vmem:[#allocation6] sm:$0x3]  ;;  %v304_v3 = vld [vmem:[#allocation6 + $0x2] sm:$0x3] }
  0x5d   : > { %632 = vmatprep.mubr.msk.bf16.mxu0 %vm890_vm0, %v889_v0  ;;  %638 = vmatprep.mubr.msk.bf16.mxu1 %vm890_vm0, %v889_v0  ;;  %v361_v4 = vld [vmem:[#allocation6 + $0x4] sm:$0x3]  ;;  %v418_v5 = vld [vmem:[#allocation6 + $0x6] sm:$0x3]  ;;  %s611_s20 = sshll.u32 %s1067_s27, 2  ;;  %s891_s24 = smov 1  }
  0x5e   : > { %631 = vmatpush3.bf16.msra.mxu0 %v736_v1  ;;  %637 = vmatpush3.bf16.msra.mxu1 %v736_v1  ;;  %s1084_s22 = scalar_lea.vmem [#allocation8], %s611_s20  ;;  %s892_s9 = smov 2   ;;  %vm354_vm2 = vcmask 1043464   ;;  %vm358_vm3 = vcmask 3072   ;;  %vm411_vm4 = vcmask 1043472   ;;  %vm415_vm5 = vcmask 11264  }
  0x5f   : > { %642 = vmatprep.subr.bf16.mxu0 %v889_v0  ;;  %648 = vmatprep.subr.bf16.mxu1 %v889_v0  ;;  %s893_s10 = smov 3   ;;  %vm468_vm6 = vcmask 1043480   ;;  %vm472_vm7 = vcmask 19456   ;;  %v475_v40 = vld [vmem:[%s1156_s2] sm:$0xf]  ;;  %s618_s26 = sshll.u32 %s873_s15, 6 }
  0x60   : > { %s493_s7 = sshll.u32 %s1084_s22, 4  ;;  %s1104_s19 = scalar_lea.hbm %s1157_s3, %s618_s26  ;;  %s1106_s7 = int_to_ptr.vmem [resolvable:$true] %s493_s7 }
  0x61   : > { %633 = vmatmul.mubr.msk.bf16.vlgmr.msra.gmra.mrb[0].mxu0 %vm253_vm1, %v246_v2  ;;  %639 = vmatmul.mubr.msk.bf16.vlgmr.msra.gmra.mrb[0].mxu1 %vm253_vm1, %v304_v3  ;;  %s479_s25 = scalar_lea.sflag [#allocation5], %s1067_s27  ;;  %s795_s29 = scalar_lea.vmem %s1106_s7, 64 }
  0x62   : > { %643 = vmatpush3.bf16.msra.mxu0 %v736_v1  ;;  %644 = vmatprep.mubr.msk.bf16.mxu0 %vm890_vm0, %v889_v0  ;;  %p796_p13 = scmp.ne.s32.totalorder %s1106_s7, %s795_s29  ;;  %s894_s15 = smov [#allocation8]  }
  0x63   : > { %649 = vmatpush3.bf16.msra.mxu1 %v736_v1  ;;  %650 = vmatprep.mubr.msk.bf16.mxu1 %vm890_vm0, %v889_v0  ;;  %v299_v6 = vld [vmem:[#allocation2] sm:$0xf]  ;;  %s799_s4 = sshll.u32 %s894_s15, 4  ;;  %s800_s4 = int_to_ptr.vmem [resolvable:$false] %s799_s4 }
  0x64   : > { %302 = vst [vmem:[#allocation2] sm:$0xf] %v889_v0  ;;  %p797_p6 = pnand %p796_p13, %p1011_p10  ;;  %s801_s6 = scalar_lea.vmem %s800_s4, 128 }
  0x65   : > { %p802_p12 = scmp.lt.s32.totalorder %s1106_s7, %s800_s4  ;;  %p803_p11 = scmp.lt.s32.totalorder %s801_s6, %s795_s29 }
  0x66   : > { %p798_p8 = pneg %p797_p6 }
  0x67   : > { %p804_p0 = por %p803_p11, %p802_p12 }
  0x69   : > { %645 = vmatmul.mubr.msk.bf16.vlgmr.msra.gmra.mrb[4].mxu0 %vm253_vm1, %v361_v4  ;;  %651 = vmatmul.mubr.msk.bf16.vlgmr.msra.gmra.mrb[4].mxu1 %vm253_vm1, %v418_v5  ;;  %p805_p5 = pnand %p804_p0, %p798_p8 }
  0x6b   : > { %v356_v25 = vld [vmem:[#allocation2] sm:$0xf] }
 0x134   : > { %v291_v7 = vpop.f32.mrb[0].mxu0  ;;  %v342_v8 = vpop.f32.mrb[0].mxu1 }
 0x135   : > { %297 = vst [vmem:[%s1084_s22] sm:$0xf] %v291_v7  ;;  %350 = vrot.lane.b32.xlu0 %v342_v8, %s891_s24  ;;  %v634_v9 = vpop.f32.mrb[1].mxu0  ;;  %v640_v10 = vpop.f32.mrb[1].mxu1 }
 0x136   : > { %v294_v11 = vpop.f32.mrb[2].mxu0  ;;  %v345_v12 = vpop.f32.mrb[2].mxu1 }
 0x137   : > { %v635_v13 = vpop.f32.mrb[3].mxu0  ;;  %v641_v14 = vpop.f32.mrb[3].mxu1 }
 0x13c   : > { %v298_v15 = vld [vmem:[%s1084_s22] sm:$0xf]  ;;  %v399_v16 = vpop.f32.mrb[4].mxu0  ;;  %v456_v17 = vpop.f32.mrb[4].mxu1 }
 0x13d   : > { %v300_v18 = vadd.f32 %v299_v6, %v298_v15  ;;  %v646_v19 = vpop.f32.mrb[5].mxu0  ;;  %407 = vrot.lane.b32.xlu0 %v399_v16, %s892_s9  ;;  %v652_v20 = vpop.f32.mrb[5].mxu1  ;;  %464 = vrot.lane.b32.xlu1 %v456_v17, %s893_s10 }
 0x13e   : > { %v402_v21 = vpop.f32.mrb[6].mxu0  ;;  %v459_v22 = vpop.f32.mrb[6].mxu1 }
 0x13f   : > { %301 = vst [vmem:[%s1084_s22] sm:$0xf] %v300_v18  ;;  %v647_v23 = vpop.f32.mrb[7].mxu0  ;;  %v653_v24 = vpop.f32.mrb[7].mxu1 }
 0x146   : > { %v348_v27 = vld [vmem:[%s1084_s22] sm:$0xf] }
 0x1a7   : > { %v351_v26 = vpop.permute.xlu0 %350 }
 0x1a8   : > { %v353_v28 = vadd.f32 %v351_v26, %v348_v27  ;;  %v357_v29 = vadd.f32 %v356_v25, %v351_v26 }
 0x1aa   : > { %355 = vst.msk [vmem:[%s1084_s22] sm:$0xf] %vm354_vm2, %v353_v28 }
 0x1ab   : > { %359 = vst.msk [vmem:[#allocation2] sm:$0xf] %vm358_vm3, %v357_v29 }
 0x1af   : > { %v408_v30 = vpop.permute.xlu0 %407  ;;  %v465_v35 = vpop.permute.xlu1 %464 }
 0x1b1   : > { %v405_v31 = vld [vmem:[%s1084_s22] sm:$0xf] }
 0x1b2   : > { %v413_v32 = vld [vmem:[#allocation2] sm:$0xf]  ;;  %v410_v33 = vadd.f32 %v408_v30, %v405_v31 }
 0x1b3   : > { %v414_v34 = vadd.f32 %v413_v32, %v408_v30 }
 0x1b4   : > { %412 = vst.msk [vmem:[%s1084_s22] sm:$0xf] %vm411_vm4, %v410_v33 }
 0x1b5   : > { %416 = vst.msk [vmem:[#allocation2] sm:$0xf] %vm415_vm5, %v414_v34 }
 0x1bb   : > { %v462_v36 = vld [vmem:[%s1084_s22] sm:$0xf] }
 0x1bc   : > { %v470_v37 = vld [vmem:[#allocation2] sm:$0xf]  ;;  %v467_v38 = vadd.f32 %v465_v35, %v462_v36 }
 0x1bd   : > { %v471_v39 = vadd.f32 %v470_v37, %v465_v35 }
 0x1be   : > { %469 = vst.msk [vmem:[%s1084_s22] sm:$0xf] %vm468_vm6, %v467_v38 }
 0x1bf   : > { %473 = vst.msk [vmem:[#allocation2] sm:$0xf] %vm472_vm7, %v471_v39 }
 0x1c5   : > { %v474_v41 = vld [vmem:[%s1084_s22] sm:$0xf] }
 0x1c6   : > { %v476_v42 = vmul.f32 %v475_v40, %v474_v41 }
 0x1c8   : > { %477 = vst [vmem:[%s1084_s22] sm:$0xf] %v476_v42 }
 0x1c9   : > { %808 = shalt.err (!%p805_p5)
}
 0x1ca   : > { %s809_s27 = scalar_lea.hbm %s1104_s19, 64  ;;  %s813_s24 = scalar_lea.hbm %s1157_s3, 128 }
 0x1cb   : > { %p810_p9 = scmp.ne.s32.totalorder %s1104_s19, %s809_s27  ;;  %p814_p3 = scmp.lt.u32.totalorder %s1104_s19, %s1157_s3 }
 0x1cc   : > { %p815_p7 = scmp.lt.u32.totalorder %s813_s24, %s809_s27  ;;  %p817_p13 = scmp.lt.u32.totalorder %s809_s27, %s1104_s19 }
 0x1cd   : > { %p811_p1 = pnand %p810_p9, %p1011_p10 }
 0x1ce   : > { %p816_p4 = por %p815_p7, %p814_p3 }
 0x1cf   : > { %p812_p2 = pneg %p811_p1 }
 0x1d0   : > { %p818_p6 = por %p817_p13, %p816_p4 }
 0x1d2   : > { %p819_p8 = pnand %p818_p6, %p812_p2 }
 0x1d4   : > { %822 = shalt.err (!%p819_p8)
}
 0x1d5   : > { %660 = dma.vmem_to_hbm [thread:$0]  (%p1011_p10), %s1106_s7, 64, %s1104_s19, %s479_s25  }
 0x1d6 PF: > { %s505_s11 = sand.u32 1, %s861_s12   ;;  %p1175_p12 = scmp.ne.s32.totalorder %s1165_s23, 0 }
 0x1d7   : > { %p1176_p11 = scmp.ge.s32.totalorder %s881_s17, 2  ;;  %s506_s18 = scalar_lea.sflag [#allocation5], %s505_s11 }
 0x1d9   : > { %p671_p0 = pnand %p1176_p11, %p1175_p12 }
 0x1db   : > { %856 = dma.done.wait (!%p671_p0), %s506_s18, 64  }
 0x1dc   : > { %858 = vsyncadd (!%p671_p0), %s506_s18, 4294967232  ;;  %s20_s17 = sadd.s32 1, %s881_s17   ;;  %s1177_s12 = smov %s865_s13 }
 0x1dd   : > { %p17_p5 = scmp.ge.s32.totalorder %s20_s17, 4   ;;  %s1178_s13 = smov %s869_s14 }
 0x1de   : > { %s1179_s14 = smov %s1020_s5  ;;  %s1180_s15 = smov %s877_s16 }
 0x1df   : > { %s1181_s16 = smov %s1183_s28  ;;  %19 = sbr.rel (!%p17_p5) target bundleno = 7 (0x7), region = 91 }
 0x1e6   :  { %511 = vsyncpa [#allocation4], 1 }
 0x1e7   :  { %513 = vsyncpa [#allocation4 + $0x1], 1 }
 0x1e8   :  { %514 = vsyncpa [#allocation7], 1 }
 0x1e9   :  { %515 = vsyncpa [#allocation5], 1 }
 0x1ea   :  { %517 = vsyncpa [#allocation5 + $0x1], 1 }

</bundles_post_ra>
